<compile_context>
chip_gen: v5e
topology: v5e:2x2
jax: 0.10.0
libtpu: 0.0.40
codegen_flags: <defaults>
</compile_context>

<pallas_src>
import jax
import jax.numpy as jnp
from jax.experimental import pallas as pl
from jax.experimental.pallas import tpu as pltpu


def _scaling_kernel(scale_ref, x_ref, y_ref):
    # (1, D) scale broadcast against the (TB, D) x tile: one VPU multiply.
    y_ref[...] = (scale_ref[...] * x_ref[...]).astype(y_ref.dtype)


def _vmem_budget_and_limit():
    """Generation-aware (budget_for_tiles, vmem_limit_bytes)."""
    try:
        cap = int(pltpu.get_tpu_info().vmem_capacity_bytes)
    except Exception:
        cap = None
    if cap is None:
        # Conservative fallback: safe under every generation's scoped default.
        return 8 * 1024 * 1024, None
    budget = min(24 * 1024 * 1024, cap // 4)          # double-buffered x+y tiles
    limit = min(cap // 2, 2 * budget + (4 << 20))      # explicit scoped limit
    return budget, limit


def _pick_batch_tile(B, D, itemsize, budget):
    """Batch-row tile: as big as the budget allows, dtype-packed, >=2 steps."""
    sub = {4: 8, 2: 16, 1: 32}.get(itemsize, 8)        # sublane packing multiple
    per_row = 2 * 2 * D * itemsize                     # (x + y tile) x 2 buffers
    max_rows = max(sub, budget // max(per_row, 1))
    total = B * D * itemsize
    if total > (2 << 20):
        # Guarantee >=2 (>=4 when large) grid steps so the pipeline overlaps
        # and v7x's second TensorCore gets work under "parallel" semantics.
        min_steps = 4 if total > (8 << 20) else 2
        max_rows = min(max_rows, -(-B // min_steps))
    if B <= max_rows:
        return B                                       # block == full array dim: OK
    return max(sub, (min(max_rows, B) // sub) * sub)


def _fold_small_lanes(B, D):
    """Largest k>=2 with B % k == 0 and k*D <= 128, else 1 (no fold)."""
    if D >= 128 or D < 1:
        return 1
    for k in range(min(128 // D, B), 1, -1):
        if B % k == 0:
            return k
    return 1


def scaling_layer(x, log_scale_vector, logdet, invert=False, tile_rows=None):
    """Pallas implementation of ScalingLayer.forward.

    Args:
      x: [B, D] float32 or bfloat16
      log_scale_vector: [1, D] float32 (the learned parameter)
      logdet: [B, 1] float32
      invert: bool (static)
      tile_rows: optional batch-tile override (testing / tuning)

    Returns:
      (y [B, D], logdet_out [B, 1])
    """
    B, D = x.shape
    sign = -1.0 if invert else 1.0
    s_f32 = log_scale_vector.astype(jnp.float32).reshape(1, D)

    # log-det update as a plain XLA add (fuses with surrounding ops; keeps the
    # kernel free of lane-width-1 blocks).
    ldj = sign * jnp.sum(s_f32)
    logdet_out = (logdet.astype(jnp.float32) + ldj).astype(logdet.dtype)

    # Precompute the scale once; kernel body stays a single multiply.
    scale = jnp.exp(sign * s_f32).astype(x.dtype)

    # Lane-dense fold for small data_dim (free reshapes, scale row tiled k x).
    k = _fold_small_lanes(B, D)
    Bk, Dk = B // k, D * k
    x_k = x.reshape(Bk, Dk) if k > 1 else x
    scale_k = jnp.tile(scale, (1, k)) if k > 1 else scale

    itemsize = jnp.dtype(x.dtype).itemsize
    budget, vmem_limit = _vmem_budget_and_limit()
    tb = tile_rows if tile_rows is not None else _pick_batch_tile(
        Bk, Dk, itemsize, budget)
    grid = (pl.cdiv(Bk, tb),)

    cost = pl.CostEstimate(
        flops=Bk * Dk,
        transcendentals=0,
        bytes_accessed=2 * Bk * Dk * itemsize + Dk * itemsize,
    )

    y_k = pl.pallas_call(
        _scaling_kernel,
        out_shape=jax.ShapeDtypeStruct((Bk, Dk), x.dtype),
        grid_spec=pltpu.PrefetchScalarGridSpec(
            num_scalar_prefetch=0,
            grid=grid,
            in_specs=[
                # scale row: constant index map -> stays resident in VMEM.
                pl.BlockSpec((1, Dk), lambda i: (0, 0)),
                # x: tiled over batch rows.
                pl.BlockSpec((tb, Dk), lambda i: (i, 0)),
            ],
            out_specs=pl.BlockSpec((tb, Dk), lambda i: (i, 0)),
        ),
        compiler_params=pltpu.CompilerParams(
            dimension_semantics=("parallel",),   # shard batch steps across TCs
            vmem_limit_bytes=vmem_limit,
        ),
        cost_estimate=cost,
    )(scale_k, x_k)

    y = y_k.reshape(B, D) if k > 1 else y_k
    return y, logdet_out


def _reference(x, s, logdet, invert):
    sign = -1.0 if invert else 1.0
    ldj = jnp.sum(s)
    return jnp.exp(sign * s) * x, logdet + sign * ldj


if __name__ == "__main__":
    key = jax.random.PRNGKey(0)
    k_x, k_s, k_ld = jax.random.split(key, 3)

    # --- Small NICE-sized test (module-consistent shapes; D<128 exercises the
    # lane-dense fold path: [2, 32] -> [1, 64]) ------------------------------
    B, D = 2, 32  # batch=2, data_dim=32
    x = jax.random.normal(k_x, (B, D), dtype=jnp.float32)
    log_scale_vector = jax.random.normal(k_s, (1, D), dtype=jnp.float32)
    logdet = jax.random.normal(k_ld, (B, 1), dtype=jnp.float32)

    y, ld = scaling_layer(x, log_scale_vector, logdet, invert=False)
    jax.block_until_ready((y, ld))
    y_ref, ld_ref = _reference(x, log_scale_vector, logdet, invert=False)
    assert jnp.allclose(y, y_ref, atol=1e-5, rtol=1e-5)
    assert jnp.allclose(ld, ld_ref, atol=1e-5, rtol=1e-5)

    # inverse (invert=True) round-trips back to x / logdet
    y_inv, ld_inv = scaling_layer(y, log_scale_vector, ld, invert=True)
    jax.block_until_ready((y_inv, ld_inv))
    assert jnp.allclose(y_inv, x, atol=1e-4, rtol=1e-4)
    assert jnp.allclose(ld_inv, logdet, atol=1e-5, rtol=1e-5)

    # --- Forced multi-step grid (tiled/pipelined path, partial last tile) ---
    B2, D2 = 20, 128  # 3 grid steps with tile_rows=8 (last tile partial)
    k_x2, k_ld2 = jax.random.split(jax.random.PRNGKey(1), 2)
    x2 = jax.random.normal(k_x2, (B2, D2), dtype=jnp.float32)
    s2 = jax.random.normal(k_s, (1, D2), dtype=jnp.float32)
    ld2 = jax.random.normal(k_ld2, (B2, 1), dtype=jnp.float32)

    y2, ldo2 = scaling_layer(x2, s2, ld2, invert=False, tile_rows=8)
    jax.block_until_ready((y2, ldo2))
    y2_ref, ldo2_ref = _reference(x2, s2, ld2, invert=False)
    assert jnp.allclose(y2, y2_ref, atol=1e-5, rtol=1e-5)
    assert jnp.allclose(ldo2, ldo2_ref, atol=1e-5, rtol=1e-5)

    # --- bf16 path (scale downcast to bf16 before the multiply) -------------
    B3, D3 = 16, 256
    k_x3, k_ld3 = jax.random.split(jax.random.PRNGKey(2), 2)
    x3 = jax.random.normal(k_x3, (B3, D3), dtype=jnp.bfloat16)
    s3 = jax.random.normal(k_s, (1, D3), dtype=jnp.float32)
    ld3 = jax.random.normal(k_ld3, (B3, 1), dtype=jnp.float32)

    y3, ldo3 = scaling_layer(x3, s3, ld3, invert=False)
    jax.block_until_ready((y3, ldo3))
    y3_ref = jnp.exp(s3).astype(jnp.bfloat16) * x3
    ldo3_ref = ld3 + jnp.sum(s3)
    assert jnp.allclose(y3.astype(jnp.float32), y3_ref.astype(jnp.float32),
                        atol=1e-2, rtol=1e-2)
    assert jnp.allclose(ldo3, ldo3_ref, atol=1e-5, rtol=1e-5)

    print("KERNEL_OK")
</pallas_src>

<mosaic_0001>
module attributes {stable_mosaic.version = 11 : i64} {
  func.func @_scaling_kernel(%arg0: i32, %arg1: memref<1x64xf32, #tpu.memory_space<vmem>>, %arg2: memref<1x64xf32, #tpu.memory_space<vmem>>, %arg3: memref<1x64xf32, #tpu.memory_space<vmem>>) attributes {dimension_semantics = [#tpu.dimension_semantics<parallel>], iteration_bounds = array<i64: 1>, scalar_prefetch = 0 : i64, scratch_operands = 0 : i64, tpu.core_type = #tpu.core_type<tc>, window_params = [{pipeline_mode = #tpu.pipeline_mode<synchronous>, transform_indices = @transform_0, window_bounds = array<i64: 1, 64>}, {transform_indices = @transform_1, window_bounds = array<i64: 1, 64>}, {transform_indices = @transform_2, window_bounds = array<i64: 1, 64>}]} {
    %c0 = arith.constant 0 : index
    %c0_0 = arith.constant 0 : index
    %0 = vector.load %arg1[%c0, %c0_0] : memref<1x64xf32, #tpu.memory_space<vmem>>, vector<1x64xf32>
    %c0_1 = arith.constant 0 : index
    %c0_2 = arith.constant 0 : index
    %1 = vector.load %arg2[%c0_1, %c0_2] : memref<1x64xf32, #tpu.memory_space<vmem>>, vector<1x64xf32>
    %2 = arith.mulf %0, %1 : vector<1x64xf32>
    %c0_3 = arith.constant 0 : index
    %c0_4 = arith.constant 0 : index
    %3 = vector.load %arg3[%c0_3, %c0_4] : memref<1x64xf32, #tpu.memory_space<vmem>>, vector<1x64xf32>
    tpu.vector_store %arg3[%c0_3, %c0_4], %2 {strides = array<i32>} : memref<1x64xf32, #tpu.memory_space<vmem>>, vector<1x64xf32>,
    return
  }
  func.func @transform_0(%arg0: i32) -> (i32, i32) {
    %c0_i32 = arith.constant 0 : i32
    %c0_i32_0 = arith.constant 0 : i32
    %c0_i32_1 = arith.constant 0 : i32
    return %c0_i32, %c0_i32_0 : i32, i32
  }
  func.func @transform_1(%arg0: i32) -> (i32, i32) {
    %c0_i32 = arith.constant 0 : i32
    %c0_i32_0 = arith.constant 0 : i32
    return %arg0, %c0_i32 : i32, i32
  }
  func.func @transform_2(%arg0: i32) -> (i32, i32) {
    %c0_i32 = arith.constant 0 : i32
    %c0_i32_0 = arith.constant 0 : i32
    return %arg0, %c0_i32 : i32, i32
  }
}

</mosaic_0001>

<bundles_post_ra>
// kernel: tpu_custom_call.1
= control target key start
LH: loop header
LB: loop body
LE: loop exit
PB: predicated region body
PF: predicated region fallthrough
CT: control target
= control target key end

     0   :  { %7 = vsyncpa [#allocation3], 0  ;;  %s171_s0 = inlined_call_operand.hbm [shape: f32[1,64], index: 0, kind: input, shape index: {}]   ;;  %s172_s1 = inlined_call_operand.hbm [shape: f32[1,64], index: 1, kind: input, shape index: {}]   ;;  %s173_s2 = inlined_call_operand.hbm [shape: f32[1,64], index: 2, kind: output, shape index: {}]  }
   0x1   :  { %8 = vsyncpa [#allocation6], 0 }
   0x2   :  { %9 = vsyncpa [#allocation4], 0  ;;  %s15_s11 = sshll.u32 %s171_s0, 4  ;;  %s144_s12 = smov [#allocation2]   ;;  %s16_s11 = int_to_ptr.hbm [resolvable:$true] %s15_s11 }
   0x3   :  { %s17_s13 = sshll.u32 %s144_s12, 4  ;;  %s26_s16 = sshll.u32 %s172_s1, 4  ;;  %s18_s13 = int_to_ptr.vmem [resolvable:$true] %s17_s13  ;;  %s27_s16 = int_to_ptr.hbm [resolvable:$true] %s26_s16 }
   0x4   :  { %20 = dma.hbm_to_vmem [thread:$0]  %s16_s11, 16, %s18_s13, [#allocation3]  }
   0x5   :  { %s145_s17 = smov [#allocation5]  }
   0x6   :  { %s28_s18 = sshll.u32 %s145_s17, 4  ;;  %s29_s18 = int_to_ptr.vmem [resolvable:$true] %s28_s18 }
   0x7   :  { %31 = dma.hbm_to_vmem [thread:$0]  %s27_s16, 16, %s29_s18, [#allocation6]  }
   0x8   :  { %138 = dma.done.wait [#allocation3], 16  }
   0x9   :  { %139 = vsyncadd [#allocation3], 4294967280 }
   0xa   :  { %140 = dma.done.wait [#allocation6], 16  }
   0xb   :  { %141 = vsyncadd [#allocation6], 4294967280  ;;  %s146_s19 = smov [#allocation7]   ;;  %s52_s22 = sshll.u32 %s173_s2, 4  ;;  %v40_v0 = vld [vmem:[#allocation2] sm:$0x1]  ;;  %s53_s22 = int_to_ptr.hbm [resolvable:$true] %s52_s22 }
   0xc   :  { %s50_s0 = sshll.u32 %s146_s19, 4  ;;  %v41_v1 = vld [vmem:[#allocation5] sm:$0x1]  ;;  %vm43_vm0 = vcmask 516096   ;;  %s51_s0 = int_to_ptr.vmem [resolvable:$true] %s50_s0 }
   0xd   :  { %v42_v2 = vmul.f32 %v41_v1, %v40_v0 }
   0xf   :  { %44 = vst.msk [vmem:[#allocation7] sm:$0x1] %vm43_vm0, %v42_v2 }
  0x10   :  { %55 = dma.vmem_to_hbm [thread:$0]  %s51_s0, 16, %s53_s22, [#allocation4]  }
  0x11   :  { %142 = dma.done.wait [#allocation4], 16  }
  0x12   :  { %143 = vsyncadd [#allocation4], 4294967280 }
  0x13   :  { %60 = vsyncpa [#allocation3], 1 }
  0x14   :  { %61 = vsyncpa [#allocation6], 1 }
  0x15   :  { %62 = vsyncpa [#allocation4], 1 }

</bundles_post_ra>
